<compile_context>
chip_gen: v7x
topology: tpu7x:2x2x1
jax: 0.10.0
libtpu: 0.0.40
codegen_flags: <defaults>
</compile_context>

<pallas_src>
import numpy as np
import jax
import jax.numpy as jnp
from jax import lax
from jax.experimental import pallas as pl
from jax.experimental.pallas import tpu as pltpu


# -----------------------------------------------------------------------------
# Model architecture constants (VGG-like demo model; shapes fixed in-script).
# -----------------------------------------------------------------------------
N_BATCH = 2
C_IN, H_IN, W_IN = 4, 16, 16
C1 = 8                             # conv1 out channels
C2 = 16                            # conv2 out channels
H1, W1 = H_IN, W_IN                # conv1 output spatial (pad=1, stride=1)
HP1, WP1 = H1 // 2, W1 // 2        # pool1 output: 8x8
HPAD2, WPAD2 = HP1 + 2, WP1 + 2    # zero-padded conv2 input grid: 10x10
HP2, WP2 = HP1 // 2, WP1 // 2      # pool2 output: 4x4
FC1_OUT = 32
N_CLASS = 10

M1 = 4 * N_BATCH * HP1 * WP1           # 512: conv1 output cols, order (pi,pj,n,io,jo)
P1_COLS = N_BATCH * HP1 * WP1          # 128: pooled1 cols, order (n,io,jo)
MARGIN = WPAD2 + 1                     # 11: lane margin so every conv2 shift is in-bounds
C2_COLS = N_BATCH * HPAD2 * WPAD2      # 200: conv2 output cols, padded raster (n,ii,jj)
PE_COLS = C2_COLS + 2 * MARGIN         # 222: extended zero-padded flat layout
M2 = 4 * N_BATCH * HP2 * WP2           # 128: gathered conv2 cols, order (pi,pj,n,io,jo)
P2_COLS = N_BATCH * HP2 * WP2          # 32 : pooled2 cols, order (n,io,jo)
FLAT = C2 * HP2 * WP2                  # 256: classifier input width

_VMEM = pl.BlockSpec(memory_space=pltpu.MemorySpace.VMEM)


# -----------------------------------------------------------------------------
# Pallas kernels
# -----------------------------------------------------------------------------
def _features_kernel(p1t_ref, w1m_ref, b1_ref, g1_ref, w2r_ref, b2_ref, g2_ref,
                     conv1_ref, pool1_ref, conv2_ref, pool2_ref):
    """Fused conv1+bias -> relu -> pool1 -> conv2+bias -> relu -> pool2.

    Captured outputs (all lane-dense (C, positions) layouts):
      conv1_ref: (C1, M1)       pre-ReLU conv1 output, cols (pi,pj,n,io,jo)
      pool1_ref: (C1, P1_COLS)  pooled1, cols (n,io,jo)
      conv2_ref: (C2, C2_COLS)  pre-ReLU conv2 output, padded raster cols (n,ii,jj)
      pool2_ref: (C2, P2_COLS)  pooled2, cols (n,io,jo)
    """
    # ---- Conv1: one MXU matmul on pre-built im2col patches, bias fused. ----
    c1 = jnp.dot(w1m_ref[...], p1t_ref[...],
                 preferred_element_type=jnp.float32) + b1_ref[...]
    conv1_ref[...] = c1                      # captured right after Conv2d (pre-ReLU)

    # ---- ReLU + MaxPool(2,2) fused: columns are grouped into 4 pool-position
    #      blocks, so pooling is an elementwise max of 4 aligned lane slices. ----
    r1 = jnp.maximum(c1, 0.0)
    q = M1 // 4
    p1 = jnp.maximum(jnp.maximum(r1[:, 0 * q:1 * q], r1[:, 1 * q:2 * q]),
                     jnp.maximum(r1[:, 2 * q:3 * q], r1[:, 3 * q:4 * q]))
    pool1_ref[...] = p1                      # captured right after MaxPool2d

    # ---- Scatter pooled1 into the zero-padded flat spatial layout (constant
    #      0/1 matmul); the zero ring implements conv2's padding=1. ----
    pe = jnp.dot(p1, g1_ref[...], preferred_element_type=jnp.float32)   # (C1, PE_COLS)

    # ---- Conv2: in-kernel im2col == 9 shifted matmuls (static lane-offset
    #      slices of the padded flat layout), accumulated in f32, bias fused. ----
    acc = jnp.dot(w2r_ref[0], pe[:, 0:C2_COLS], preferred_element_type=jnp.float32)
    for k in range(1, 9):
        di, dj = k // 3, k % 3
        off = di * WPAD2 + dj
        acc = acc + jnp.dot(w2r_ref[k], pe[:, off:off + C2_COLS],
                            preferred_element_type=jnp.float32)
    c2 = acc + b2_ref[...]
    conv2_ref[...] = c2                      # captured right after Conv2d (pre-ReLU)

    # ---- ReLU + MaxPool(2,2): gather valid positions into 4 pool-position
    #      blocks via a constant 0/1 matmul, then max the 4 lane blocks. ----
    r2 = jnp.maximum(c2, 0.0)
    rp = jnp.dot(r2, g2_ref[...], preferred_element_type=jnp.float32)   # (C2, M2)
    q2 = M2 // 4
    p2 = jnp.maximum(jnp.maximum(rp[:, 0 * q2:1 * q2], rp[:, 1 * q2:2 * q2]),
                     jnp.maximum(rp[:, 2 * q2:3 * q2], rp[:, 3 * q2:4 * q2]))
    pool2_ref[...] = p2                      # captured right after MaxPool2d


def _classifier_kernel(x_ref, w1t_ref, b1_ref, w2t_ref, b2_ref, fc1_ref, fc2_ref):
    """Fused Linear+bias -> ReLU -> Linear+bias (both Linear outputs captured)."""
    y1 = jnp.dot(x_ref[...], w1t_ref[...],
                 preferred_element_type=jnp.float32) + b1_ref[...]
    fc1_ref[...] = y1                        # captured right after Linear (pre-ReLU)
    h = jnp.maximum(y1, 0.0)
    fc2_ref[...] = jnp.dot(h, w2t_ref[...],
                           preferred_element_type=jnp.float32) + b2_ref[...]


# -----------------------------------------------------------------------------
# pallas_call wrappers (single block, everything resident in VMEM; total <1 MiB)
# -----------------------------------------------------------------------------
def _features_call(p1t, w1m, b1c, g1, w2r, b2c, g2):
    return pl.pallas_call(
        _features_kernel,
        out_shape=(jax.ShapeDtypeStruct((C1, M1), jnp.float32),
                   jax.ShapeDtypeStruct((C1, P1_COLS), jnp.float32),
                   jax.ShapeDtypeStruct((C2, C2_COLS), jnp.float32),
                   jax.ShapeDtypeStruct((C2, P2_COLS), jnp.float32)),
        in_specs=[_VMEM] * 7,
        out_specs=(_VMEM, _VMEM, _VMEM, _VMEM),
    )(p1t, w1m, b1c, g1, w2r, b2c, g2)


def _classifier_call(xflat, w1t, b1r, w2t, b2r):
    return pl.pallas_call(
        _classifier_kernel,
        out_shape=(jax.ShapeDtypeStruct((N_BATCH, FC1_OUT), jnp.float32),
                   jax.ShapeDtypeStruct((N_BATCH, N_CLASS), jnp.float32)),
        in_specs=[_VMEM] * 5,
        out_specs=(_VMEM, _VMEM),
    )(xflat, w1t, b1r, w2t, b2r)


# -----------------------------------------------------------------------------
# Constant 0/1 gather matrices (built once with numpy; tiny).
# -----------------------------------------------------------------------------
def _build_g1():
    """(P1_COLS, PE_COLS): scatter pooled1 cols (n,io,jo) into the zero-padded
    extended flat layout (margin | n,ii,jj over 10x10 | margin)."""
    g = np.zeros((P1_COLS, PE_COLS), np.float32)
    for n in range(N_BATCH):
        for io in range(HP1):
            for jo in range(WP1):
                u = (n * HP1 + io) * WP1 + jo
                t = MARGIN + n * HPAD2 * WPAD2 + (io + 1) * WPAD2 + (jo + 1)
                g[u, t] = 1.0
    return jnp.asarray(g)


def _build_g2():
    """(C2_COLS, M2): gather valid conv2 columns (padded raster) into 4
    pool-position blocks ordered (pi,pj,n,io,jo)."""
    g = np.zeros((C2_COLS, M2), np.float32)
    for pi in range(2):
        for pj in range(2):
            for n in range(N_BATCH):
                for io in range(HP2):
                    for jo in range(WP2):
                        v = (((pi * 2 + pj) * N_BATCH + n) * HP2 + io) * WP2 + jo
                        i2, j2 = 2 * io + pi, 2 * jo + pj
                        t = n * HPAD2 * WPAD2 + (i2 + 1) * WPAD2 + (j2 + 1)
                        g[t, v] = 1.0
    return jnp.asarray(g)


# -----------------------------------------------------------------------------
# XLA glue: input-side im2col for conv1, and NCHW views of the captured neurons.
# -----------------------------------------------------------------------------
def _conv1_patches(x):
    """(C_IN*9, M1) im2col matrix with columns ordered (pi, pj, n, io, jo)."""
    xpad = jnp.pad(x, ((0, 0), (0, 0), (1, 1), (1, 1)))
    wins = jnp.stack([xpad[:, :, di:di + H1, dj:dj + W1]
                      for di in range(3) for dj in range(3)], axis=2)  # (N,Cin,9,H,W)
    wins = wins.reshape(N_BATCH, C_IN, 9, HP1, 2, WP1, 2)              # i=2*io+pi, j=2*jo+pj
    p1t = wins.transpose(1, 2, 4, 6, 0, 3, 5).reshape(C_IN * 9, M1)
    return p1t


def _conv1_nchw(o):   # (C1, M1) cols (pi,pj,n,io,jo) -> (N, C1, H1, W1)
    t = o.reshape(C1, 2, 2, N_BATCH, HP1, WP1).transpose(3, 0, 4, 1, 5, 2)
    return t.reshape(N_BATCH, C1, H1, W1)


def _pool1_nchw(o):   # (C1, P1_COLS) cols (n,io,jo) -> (N, C1, 8, 8)
    return o.reshape(C1, N_BATCH, HP1, WP1).transpose(1, 0, 2, 3)


def _conv2_nchw(o):   # (C2, C2_COLS) padded raster -> interior -> (N, C2, 8, 8)
    t = o.reshape(C2, N_BATCH, HPAD2, WPAD2)[:, :, 1:1 + HP1, 1:1 + WP1]
    return t.transpose(1, 0, 2, 3)


def _pool2_nchw(o):   # (C2, P2_COLS) cols (n,io,jo) -> (N, C2, 4, 4)
    return o.reshape(C2, N_BATCH, HP2, WP2).transpose(1, 0, 2, 3)


@jax.jit
def _fused_forward(x, w1m, b1c, g1, w2r, b2c, g2, wfc1t, bfc1r, wfc2t, bfc2r):
    p1t = _conv1_patches(x)
    conv1_raw, pool1_raw, conv2_raw, pool2_raw = _features_call(
        p1t, w1m, b1c, g1, w2r, b2c, g2)
    n0 = _conv1_nchw(conv1_raw)
    n1 = _pool1_nchw(pool1_raw)
    n2 = _conv2_nchw(conv2_raw)
    n3 = _pool2_nchw(pool2_raw)
    xflat = n3.reshape(N_BATCH, FLAT)        # == torch x.view(len(x), -1) on NCHW
    n4, n5 = _classifier_call(xflat, wfc1t, bfc1r, wfc2t, bfc2r)
    return n0, n1, n2, n3, n4, n5


# -----------------------------------------------------------------------------
# Extractor forward pass (mirrors the PyTorch module's outputs)
# -----------------------------------------------------------------------------
class ExtractorPallas:
    """Fused-Pallas forward of `Extractor` for the VGG-like demo model:
       features  : [Conv2d(4->8), ReLU, MaxPool2d, Conv2d(8->16), ReLU, MaxPool2d]
       classifier: [Linear(256->32), ReLU, Linear(32->10)]
    """
    FEATURES_LAYERS = [0, 2, 3, 5]     # indices of Conv2d / MaxPool2d modules
    CLASSIFIER_LAYERS = [0, 2]         # indices of Linear modules

    def __init__(self, w_conv1, b_conv1, w_conv2, b_conv2,
                 w_fc1, b_fc1, w_fc2, b_fc2, epsilon=0.0):
        self.epsilon = epsilon   # only used by the LRP backward helpers (not forward)
        # Weight layouts prepared once (lane-dense matmul orientation).
        self.w1m = jnp.asarray(w_conv1).reshape(C1, C_IN * 9)          # (8, 36)
        self.b1c = jnp.asarray(b_conv1).reshape(C1, 1)
        self.w2r = jnp.transpose(jnp.asarray(w_conv2), (2, 3, 0, 1)).reshape(9, C2, C1)
        self.b2c = jnp.asarray(b_conv2).reshape(C2, 1)
        self.g1 = _build_g1()
        self.g2 = _build_g2()
        self.wfc1t = jnp.asarray(w_fc1).T                              # (256, 32)
        self.bfc1r = jnp.asarray(b_fc1).reshape(1, FC1_OUT)
        self.wfc2t = jnp.asarray(w_fc2).T                              # (32, 10)
        self.bfc2r = jnp.asarray(b_fc2).reshape(1, N_CLASS)

    def forward(self, x):
        neurons = list(_fused_forward(
            x, self.w1m, self.b1c, self.g1, self.w2r, self.b2c, self.g2,
            self.wfc1t, self.bfc1r, self.wfc2t, self.bfc2r))
        return neurons, list(self.FEATURES_LAYERS), list(self.CLASSIFIER_LAYERS)

    # TODO(synk): linear_back / maxpool_back / conv_back (LRP) are not implemented
    #             (not exercised by forward()).


# -----------------------------------------------------------------------------
# Pure-JAX reference (for correctness check of the fused Pallas forward)
# -----------------------------------------------------------------------------
def _ref_forward(x, features, classifier):
    neurons = []
    for module in features:
        kind = module[0]
        if kind == "conv":
            _, w, b = module
            x = lax.conv_general_dilated(
                x, w, window_strides=(1, 1), padding=((1, 1), (1, 1)),
                dimension_numbers=("NCHW", "OIHW", "NCHW"),
            ) + b[None, :, None, None]
            neurons.append(x)
        elif kind == "relu":
            x = jnp.maximum(x, 0.0)
        elif kind == "maxpool":
            x = lax.reduce_window(x, -jnp.inf, lax.max, (1, 1, 2, 2), (1, 1, 2, 2), "VALID")
            neurons.append(x)
    x = x.reshape(x.shape[0], -1)
    for module in classifier:
        kind = module[0]
        if kind == "linear":
            _, w, b = module
            x = x @ w.T + b
            neurons.append(x)
        elif kind == "relu":
            x = jnp.maximum(x, 0.0)
    return neurons


# -----------------------------------------------------------------------------
# Main
# -----------------------------------------------------------------------------
if __name__ == "__main__":
    key = jax.random.PRNGKey(0)
    k_in, k1, k2, k3, k4 = jax.random.split(key, 5)

    # Input: N=2, C=4, H=W=16 (NCHW, like torch)
    x = jax.random.normal(k_in, (N_BATCH, C_IN, H_IN, W_IN), dtype=jnp.float32)

    # Deterministic synthetic parameters (shapes follow the VGG-like model above).
    w_conv1 = 0.1 * jax.random.normal(k1, (C1, C_IN, 3, 3), dtype=jnp.float32)
    b_conv1 = 0.01 * jnp.arange(C1, dtype=jnp.float32)
    w_conv2 = 0.1 * jax.random.normal(k2, (C2, C1, 3, 3), dtype=jnp.float32)
    b_conv2 = 0.01 * jnp.arange(C2, dtype=jnp.float32)
    w_fc1 = 0.05 * jax.random.normal(k3, (FC1_OUT, FLAT), dtype=jnp.float32)
    b_fc1 = 0.01 * jnp.arange(FC1_OUT, dtype=jnp.float32)
    w_fc2 = 0.05 * jax.random.normal(k4, (N_CLASS, FC1_OUT), dtype=jnp.float32)
    b_fc2 = 0.01 * jnp.arange(N_CLASS, dtype=jnp.float32)

    model = ExtractorPallas(w_conv1, b_conv1, w_conv2, b_conv2,
                            w_fc1, b_fc1, w_fc2, b_fc2, epsilon=0.01)
    neurons, features_layers, classifier_layers = model.forward(x)
    neurons = [jax.block_until_ready(n) for n in neurons]

    # Sanity-check against a pure-JAX reference.
    features = [("conv", w_conv1, b_conv1), ("relu",), ("maxpool",),
                ("conv", w_conv2, b_conv2), ("relu",), ("maxpool",)]
    classifier = [("linear", w_fc1, b_fc1), ("relu",), ("linear", w_fc2, b_fc2)]
    ref_neurons = _ref_forward(x, features, classifier)

    assert features_layers == [0, 2, 3, 5], features_layers
    assert classifier_layers == [0, 2], classifier_layers
    assert len(neurons) == len(ref_neurons)
    for got, ref in zip(neurons, ref_neurons):
        assert got.shape == ref.shape, (got.shape, ref.shape)
        assert jnp.allclose(got, ref, atol=1e-4, rtol=1e-4), "mismatch vs reference"

    print("KERNEL_OK")
</pallas_src>

<mosaic_0001>
module attributes {stable_mosaic.version = 11 : i64} {
  func.func @_features_kernel(%arg0: memref<36x512xf32, #tpu.memory_space<vmem>>, %arg1: memref<8x36xf32, #tpu.memory_space<vmem>>, %arg2: memref<8x1xf32, #tpu.memory_space<vmem>>, %arg3: memref<128x222xf32, #tpu.memory_space<vmem>>, %arg4: memref<9x16x8xf32, #tpu.memory_space<vmem>>, %arg5: memref<16x1xf32, #tpu.memory_space<vmem>>, %arg6: memref<200x128xf32, #tpu.memory_space<vmem>>, %arg7: memref<8x512xf32, #tpu.memory_space<vmem>>, %arg8: memref<8x128xf32, #tpu.memory_space<vmem>>, %arg9: memref<16x200xf32, #tpu.memory_space<vmem>>, %arg10: memref<16x32xf32, #tpu.memory_space<vmem>>) attributes {dimension_semantics = [], scalar_prefetch = 0 : i64, scratch_operands = 0 : i64, tpu.core_type = #tpu.core_type<tc>} {
    %c0 = arith.constant 0 : index
    %c0_0 = arith.constant 0 : index
    %0 = vector.load %arg1[%c0, %c0_0] : memref<8x36xf32, #tpu.memory_space<vmem>>, vector<8x36xf32>
    %c0_1 = arith.constant 0 : index
    %c0_2 = arith.constant 0 : index
    %1 = vector.load %arg0[%c0_1, %c0_2] : memref<36x512xf32, #tpu.memory_space<vmem>>, vector<36x512xf32>
    %cst = arith.constant dense<0.000000e+00> : vector<8x512xf32>
    %2 = tpu.matmul %0, %1, %cst {dimension_numbers = #tpu.dot_dimension_numbers<[1], [0], [0], [1], [0, 0, 1, 1], [], []>} : vector<8x36xf32>, vector<36x512xf32>, vector<8x512xf32> -> vector<8x512xf32>
    %c0_3 = arith.constant 0 : index
    %c0_4 = arith.constant 0 : index
    %3 = vector.load %arg2[%c0_3, %c0_4] : memref<8x1xf32, #tpu.memory_space<vmem>>, vector<8x1xf32>
    %4 = vector.broadcast %3 : vector<8x1xf32> to vector<8x512xf32>
    %5 = arith.addf %2, %4 : vector<8x512xf32>
    %c0_5 = arith.constant 0 : index
    %c0_6 = arith.constant 0 : index
    %6 = vector.load %arg7[%c0_5, %c0_6] : memref<8x512xf32, #tpu.memory_space<vmem>>, vector<8x512xf32>
    tpu.vector_store %arg7[%c0_5, %c0_6], %5 {strides = array<i32>} : memref<8x512xf32, #tpu.memory_space<vmem>>, vector<8x512xf32>,
    %cst_7 = arith.constant 0.000000e+00 : f32
    %7 = vector.broadcast %cst_7 : f32 to vector<8x512xf32>
    %8 = arith.maximumf %5, %7 : vector<8x512xf32>
    %9 = vector.extract_strided_slice %8 {offsets = [0, 0], sizes = [8, 128], strides = [1, 1]} : vector<8x512xf32> to vector<8x128xf32>
    %10 = vector.extract_strided_slice %8 {offsets = [0, 128], sizes = [8, 128], strides = [1, 1]} : vector<8x512xf32> to vector<8x128xf32>
    %11 = arith.maximumf %9, %10 : vector<8x128xf32>
    %12 = vector.extract_strided_slice %8 {offsets = [0, 256], sizes = [8, 128], strides = [1, 1]} : vector<8x512xf32> to vector<8x128xf32>
    %13 = vector.extract_strided_slice %8 {offsets = [0, 384], sizes = [8, 128], strides = [1, 1]} : vector<8x512xf32> to vector<8x128xf32>
    %14 = arith.maximumf %12, %13 : vector<8x128xf32>
    %15 = arith.maximumf %11, %14 : vector<8x128xf32>
    %c0_8 = arith.constant 0 : index
    %c0_9 = arith.constant 0 : index
    %16 = vector.load %arg8[%c0_8, %c0_9] : memref<8x128xf32, #tpu.memory_space<vmem>>, vector<8x128xf32>
    tpu.vector_store %arg8[%c0_8, %c0_9], %15 {strides = array<i32>} : memref<8x128xf32, #tpu.memory_space<vmem>>, vector<8x128xf32>,
    %c0_10 = arith.constant 0 : index
    %c0_11 = arith.constant 0 : index
    %17 = vector.load %arg3[%c0_10, %c0_11] : memref<128x222xf32, #tpu.memory_space<vmem>>, vector<128x222xf32>
    %cst_12 = arith.constant dense<0.000000e+00> : vector<8x222xf32>
    %18 = tpu.matmul %15, %17, %cst_12 {dimension_numbers = #tpu.dot_dimension_numbers<[1], [0], [0], [1], [0, 0, 1, 1], [], []>} : vector<8x128xf32>, vector<128x222xf32>, vector<8x222xf32> -> vector<8x222xf32>
    %c0_13 = arith.constant 0 : index
    %c0_14 = arith.constant 0 : index
    %c0_15 = arith.constant 0 : index
    %19 = vector.load %arg4[%c0_13, %c0_14, %c0_15] : memref<9x16x8xf32, #tpu.memory_space<vmem>>, vector<1x16x8xf32>
    %20 = vector.shape_cast %19 : vector<1x16x8xf32> to vector<16x8xf32>
    %21 = vector.extract_strided_slice %18 {offsets = [0, 0], sizes = [8, 200], strides = [1, 1]} : vector<8x222xf32> to vector<8x200xf32>
    %cst_16 = arith.constant dense<0.000000e+00> : vector<16x200xf32>
    %22 = tpu.matmul %20, %21, %cst_16 {dimension_numbers = #tpu.dot_dimension_numbers<[1], [0], [0], [1], [0, 0, 1, 1], [], []>} : vector<16x8xf32>, vector<8x200xf32>, vector<16x200xf32> -> vector<16x200xf32>
    %c1 = arith.constant 1 : index
    %c0_17 = arith.constant 0 : index
    %c0_18 = arith.constant 0 : index
    %23 = vector.load %arg4[%c1, %c0_17, %c0_18] : memref<9x16x8xf32, #tpu.memory_space<vmem>>, vector<1x16x8xf32>
    %24 = vector.shape_cast %23 : vector<1x16x8xf32> to vector<16x8xf32>
    %25 = vector.extract_strided_slice %18 {offsets = [0, 1], sizes = [8, 200], strides = [1, 1]} : vector<8x222xf32> to vector<8x200xf32>
    %cst_19 = arith.constant dense<0.000000e+00> : vector<16x200xf32>
    %26 = tpu.matmul %24, %25, %cst_19 {dimension_numbers = #tpu.dot_dimension_numbers<[1], [0], [0], [1], [0, 0, 1, 1], [], []>} : vector<16x8xf32>, vector<8x200xf32>, vector<16x200xf32> -> vector<16x200xf32>
    %27 = arith.addf %22, %26 : vector<16x200xf32>
    %c2 = arith.constant 2 : index
    %c0_20 = arith.constant 0 : index
    %c0_21 = arith.constant 0 : index
    %28 = vector.load %arg4[%c2, %c0_20, %c0_21] : memref<9x16x8xf32, #tpu.memory_space<vmem>>, vector<1x16x8xf32>
    %29 = vector.shape_cast %28 : vector<1x16x8xf32> to vector<16x8xf32>
    %30 = vector.extract_strided_slice %18 {offsets = [0, 2], sizes = [8, 200], strides = [1, 1]} : vector<8x222xf32> to vector<8x200xf32>
    %cst_22 = arith.constant dense<0.000000e+00> : vector<16x200xf32>
    %31 = tpu.matmul %29, %30, %cst_22 {dimension_numbers = #tpu.dot_dimension_numbers<[1], [0], [0], [1], [0, 0, 1, 1], [], []>} : vector<16x8xf32>, vector<8x200xf32>, vector<16x200xf32> -> vector<16x200xf32>
    %32 = arith.addf %27, %31 : vector<16x200xf32>
    %c3 = arith.constant 3 : index
    %c0_23 = arith.constant 0 : index
    %c0_24 = arith.constant 0 : index
    %33 = vector.load %arg4[%c3, %c0_23, %c0_24] : memref<9x16x8xf32, #tpu.memory_space<vmem>>, vector<1x16x8xf32>
    %34 = vector.shape_cast %33 : vector<1x16x8xf32> to vector<16x8xf32>
    %35 = vector.extract_strided_slice %18 {offsets = [0, 10], sizes = [8, 200], strides = [1, 1]} : vector<8x222xf32> to vector<8x200xf32>
    %cst_25 = arith.constant dense<0.000000e+00> : vector<16x200xf32>
    %36 = tpu.matmul %34, %35, %cst_25 {dimension_numbers = #tpu.dot_dimension_numbers<[1], [0], [0], [1], [0, 0, 1, 1], [], []>} : vector<16x8xf32>, vector<8x200xf32>, vector<16x200xf32> -> vector<16x200xf32>
    %37 = arith.addf %32, %36 : vector<16x200xf32>
    %c4 = arith.constant 4 : index
    %c0_26 = arith.constant 0 : index
    %c0_27 = arith.constant 0 : index
    %38 = vector.load %arg4[%c4, %c0_26, %c0_27] : memref<9x16x8xf32, #tpu.memory_space<vmem>>, vector<1x16x8xf32>
    %39 = vector.shape_cast %38 : vector<1x16x8xf32> to vector<16x8xf32>
    %40 = vector.extract_strided_slice %18 {offsets = [0, 11], sizes = [8, 200], strides = [1, 1]} : vector<8x222xf32> to vector<8x200xf32>
    %cst_28 = arith.constant dense<0.000000e+00> : vector<16x200xf32>
    %41 = tpu.matmul %39, %40, %cst_28 {dimension_numbers = #tpu.dot_dimension_numbers<[1], [0], [0], [1], [0, 0, 1, 1], [], []>} : vector<16x8xf32>, vector<8x200xf32>, vector<16x200xf32> -> vector<16x200xf32>
    %42 = arith.addf %37, %41 : vector<16x200xf32>
    %c5 = arith.constant 5 : index
    %c0_29 = arith.constant 0 : index
    %c0_30 = arith.constant 0 : index
    %43 = vector.load %arg4[%c5, %c0_29, %c0_30] : memref<9x16x8xf32, #tpu.memory_space<vmem>>, vector<1x16x8xf32>
    %44 = vector.shape_cast %43 : vector<1x16x8xf32> to vector<16x8xf32>
    %45 = vector.extract_strided_slice %18 {offsets = [0, 12], sizes = [8, 200], strides = [1, 1]} : vector<8x222xf32> to vector<8x200xf32>
    %cst_31 = arith.constant dense<0.000000e+00> : vector<16x200xf32>
    %46 = tpu.matmul %44, %45, %cst_31 {dimension_numbers = #tpu.dot_dimension_numbers<[1], [0], [0], [1], [0, 0, 1, 1], [], []>} : vector<16x8xf32>, vector<8x200xf32>, vector<16x200xf32> -> vector<16x200xf32>
    %47 = arith.addf %42, %46 : vector<16x200xf32>
    %c6 = arith.constant 6 : index
    %c0_32 = arith.constant 0 : index
    %c0_33 = arith.constant 0 : index
    %48 = vector.load %arg4[%c6, %c0_32, %c0_33] : memref<9x16x8xf32, #tpu.memory_space<vmem>>, vector<1x16x8xf32>
    %49 = vector.shape_cast %48 : vector<1x16x8xf32> to vector<16x8xf32>
    %50 = vector.extract_strided_slice %18 {offsets = [0, 20], sizes = [8, 200], strides = [1, 1]} : vector<8x222xf32> to vector<8x200xf32>
    %cst_34 = arith.constant dense<0.000000e+00> : vector<16x200xf32>
    %51 = tpu.matmul %49, %50, %cst_34 {dimension_numbers = #tpu.dot_dimension_numbers<[1], [0], [0], [1], [0, 0, 1, 1], [], []>} : vector<16x8xf32>, vector<8x200xf32>, vector<16x200xf32> -> vector<16x200xf32>
    %52 = arith.addf %47, %51 : vector<16x200xf32>
    %c7 = arith.constant 7 : index
    %c0_35 = arith.constant 0 : index
    %c0_36 = arith.constant 0 : index
    %53 = vector.load %arg4[%c7, %c0_35, %c0_36] : memref<9x16x8xf32, #tpu.memory_space<vmem>>, vector<1x16x8xf32>
    %54 = vector.shape_cast %53 : vector<1x16x8xf32> to vector<16x8xf32>
    %55 = vector.extract_strided_slice %18 {offsets = [0, 21], sizes = [8, 200], strides = [1, 1]} : vector<8x222xf32> to vector<8x200xf32>
    %cst_37 = arith.constant dense<0.000000e+00> : vector<16x200xf32>
    %56 = tpu.matmul %54, %55, %cst_37 {dimension_numbers = #tpu.dot_dimension_numbers<[1], [0], [0], [1], [0, 0, 1, 1], [], []>} : vector<16x8xf32>, vector<8x200xf32>, vector<16x200xf32> -> vector<16x200xf32>
    %57 = arith.addf %52, %56 : vector<16x200xf32>
    %c8 = arith.constant 8 : index
    %c0_38 = arith.constant 0 : index
    %c0_39 = arith.constant 0 : index
    %58 = vector.load %arg4[%c8, %c0_38, %c0_39] : memref<9x16x8xf32, #tpu.memory_space<vmem>>, vector<1x16x8xf32>
    %59 = vector.shape_cast %58 : vector<1x16x8xf32> to vector<16x8xf32>
    %60 = vector.extract_strided_slice %18 {offsets = [0, 22], sizes = [8, 200], strides = [1, 1]} : vector<8x222xf32> to vector<8x200xf32>
    %cst_40 = arith.constant dense<0.000000e+00> : vector<16x200xf32>
    %61 = tpu.matmul %59, %60, %cst_40 {dimension_numbers = #tpu.dot_dimension_numbers<[1], [0], [0], [1], [0, 0, 1, 1], [], []>} : vector<16x8xf32>, vector<8x200xf32>, vector<16x200xf32> -> vector<16x200xf32>
    %62 = arith.addf %57, %61 : vector<16x200xf32>
    %c0_41 = arith.constant 0 : index
    %c0_42 = arith.constant 0 : index
    %63 = vector.load %arg5[%c0_41, %c0_42] : memref<16x1xf32, #tpu.memory_space<vmem>>, vector<16x1xf32>
    %64 = vector.broadcast %63 : vector<16x1xf32> to vector<16x200xf32>
    %65 = arith.addf %62, %64 : vector<16x200xf32>
    %c0_43 = arith.constant 0 : index
    %c0_44 = arith.constant 0 : index
    %66 = vector.load %arg9[%c0_43, %c0_44] : memref<16x200xf32, #tpu.memory_space<vmem>>, vector<16x200xf32>
    tpu.vector_store %arg9[%c0_43, %c0_44], %65 {strides = array<i32>} : memref<16x200xf32, #tpu.memory_space<vmem>>, vector<16x200xf32>,
    %cst_45 = arith.constant 0.000000e+00 : f32
    %67 = vector.broadcast %cst_45 : f32 to vector<16x200xf32>
    %68 = arith.maximumf %65, %67 : vector<16x200xf32>
    %c0_46 = arith.constant 0 : index
    %c0_47 = arith.constant 0 : index
    %69 = vector.load %arg6[%c0_46, %c0_47] : memref<200x128xf32, #tpu.memory_space<vmem>>, vector<200x128xf32>
    %cst_48 = arith.constant dense<0.000000e+00> : vector<16x128xf32>
    %70 = tpu.matmul %68, %69, %cst_48 {dimension_numbers = #tpu.dot_dimension_numbers<[1], [0], [0], [1], [0, 0, 1, 1], [], []>} : vector<16x200xf32>, vector<200x128xf32>, vector<16x128xf32> -> vector<16x128xf32>
    %71 = vector.extract_strided_slice %70 {offsets = [0, 0], sizes = [16, 32], strides = [1, 1]} : vector<16x128xf32> to vector<16x32xf32>
    %72 = vector.extract_strided_slice %70 {offsets = [0, 32], sizes = [16, 32], strides = [1, 1]} : vector<16x128xf32> to vector<16x32xf32>
    %73 = arith.maximumf %71, %72 : vector<16x32xf32>
    %74 = vector.extract_strided_slice %70 {offsets = [0, 64], sizes = [16, 32], strides = [1, 1]} : vector<16x128xf32> to vector<16x32xf32>
    %75 = vector.extract_strided_slice %70 {offsets = [0, 96], sizes = [16, 32], strides = [1, 1]} : vector<16x128xf32> to vector<16x32xf32>
    %76 = arith.maximumf %74, %75 : vector<16x32xf32>
    %77 = arith.maximumf %73, %76 : vector<16x32xf32>
    %c0_49 = arith.constant 0 : index
    %c0_50 = arith.constant 0 : index
    %78 = vector.load %arg10[%c0_49, %c0_50] : memref<16x32xf32, #tpu.memory_space<vmem>>, vector<16x32xf32>
    tpu.vector_store %arg10[%c0_49, %c0_50], %77 {strides = array<i32>} : memref<16x32xf32, #tpu.memory_space<vmem>>, vector<16x32xf32>,
    return
  }
}

module attributes {stable_mosaic.version = 11 : i64} {
  func.func @_classifier_kernel(%arg0: memref<2x256xf32, #tpu.memory_space<vmem>>, %arg1: memref<256x32xf32, #tpu.memory_space<vmem>>, %arg2: memref<1x32xf32, #tpu.memory_space<vmem>>, %arg3: memref<32x10xf32, #tpu.memory_space<vmem>>, %arg4: memref<1x10xf32, #tpu.memory_space<vmem>>, %arg5: memref<2x32xf32, #tpu.memory_space<vmem>>, %arg6: memref<2x10xf32, #tpu.memory_space<vmem>>) attributes {dimension_semantics = [], scalar_prefetch = 0 : i64, scratch_operands = 0 : i64, tpu.core_type = #tpu.core_type<tc>} {
    %c0 = arith.constant 0 : index
    %c0_0 = arith.constant 0 : index
    %0 = vector.load %arg0[%c0, %c0_0] : memref<2x256xf32, #tpu.memory_space<vmem>>, vector<2x256xf32>
    %c0_1 = arith.constant 0 : index
    %c0_2 = arith.constant 0 : index
    %1 = vector.load %arg1[%c0_1, %c0_2] : memref<256x32xf32, #tpu.memory_space<vmem>>, vector<256x32xf32>
    %cst = arith.constant dense<0.000000e+00> : vector<2x32xf32>
    %2 = tpu.matmul %0, %1, %cst {dimension_numbers = #tpu.dot_dimension_numbers<[1], [0], [0], [1], [0, 0, 1, 1], [], []>} : vector<2x256xf32>, vector<256x32xf32>, vector<2x32xf32> -> vector<2x32xf32>
    %c0_3 = arith.constant 0 : index
    %c0_4 = arith.constant 0 : index
    %3 = vector.load %arg2[%c0_3, %c0_4] : memref<1x32xf32, #tpu.memory_space<vmem>>, vector<1x32xf32>
    %4 = vector.broadcast %3 : vector<1x32xf32> to vector<2x32xf32>
    %5 = arith.addf %2, %4 : vector<2x32xf32>
    %c0_5 = arith.constant 0 : index
    %c0_6 = arith.constant 0 : index
    %6 = vector.load %arg5[%c0_5, %c0_6] : memref<2x32xf32, #tpu.memory_space<vmem>>, vector<2x32xf32>
    tpu.vector_store %arg5[%c0_5, %c0_6], %5 {strides = array<i32>} : memref<2x32xf32, #tpu.memory_space<vmem>>, vector<2x32xf32>,
    %cst_7 = arith.constant 0.000000e+00 : f32
    %7 = vector.broadcast %cst_7 : f32 to vector<2x32xf32>
    %8 = arith.maximumf %5, %7 : vector<2x32xf32>
    %c0_8 = arith.constant 0 : index
    %c0_9 = arith.constant 0 : index
    %9 = vector.load %arg3[%c0_8, %c0_9] : memref<32x10xf32, #tpu.memory_space<vmem>>, vector<32x10xf32>
    %cst_10 = arith.constant dense<0.000000e+00> : vector<2x10xf32>
    %10 = tpu.matmul %8, %9, %cst_10 {dimension_numbers = #tpu.dot_dimension_numbers<[1], [0], [0], [1], [0, 0, 1, 1], [], []>} : vector<2x32xf32>, vector<32x10xf32>, vector<2x10xf32> -> vector<2x10xf32>
    %c0_11 = arith.constant 0 : index
    %c0_12 = arith.constant 0 : index
    %11 = vector.load %arg4[%c0_11, %c0_12] : memref<1x10xf32, #tpu.memory_space<vmem>>, vector<1x10xf32>
    %12 = vector.broadcast %11 : vector<1x10xf32> to vector<2x10xf32>
    %13 = arith.addf %10, %12 : vector<2x10xf32>
    %c0_13 = arith.constant 0 : index
    %c0_14 = arith.constant 0 : index
    %14 = vector.load %arg6[%c0_13, %c0_14] : memref<2x10xf32, #tpu.memory_space<vmem>>, vector<2x10xf32>
    tpu.vector_store %arg6[%c0_13, %c0_14], %13 {strides = array<i32>} : memref<2x10xf32, #tpu.memory_space<vmem>>, vector<2x10xf32>,
    return
  }
}

</mosaic_0001>

<bundles_post_ra>
// kernel: _fused_forward.2
= control target key start
LH: loop header
LB: loop body
LE: loop exit
PB: predicated region body
PF: predicated region fallthrough
CT: control target
= control target key end

     0   :  { %v1542_v3 = vmov 0.0   ;;  %v1543_v4 = vmov 0   ;;  %vm61_vm0 = vcmask 1043456   ;;  %vm57_vm1 = vcmask 293888   ;;  %s1544_s21 = smov 126   ;;  %s1546_s24 = smov 117   ;;  %s2002_s0 = inlined_call_operand.vmem [shape: f32[36,512], index: 0, kind: input, shape index: {}]   ;;  %s2003_s2 = inlined_call_operand.vmem [shape: f32[8,1], index: 2, kind: input, shape index: {}]   ;;  %s2004_s3 = inlined_call_operand.vmem [shape: f32[128,222], index: 3, kind: input, shape index: {}]   ;;  %s2005_s1 = inlined_call_operand.vmem [shape: f32[8,36], index: 1, kind: input, shape index: {}]   ;;  %s2006_s7 = inlined_call_operand.vmem [shape: f32[8,512], index: 7, kind: output, shape index: {0}]   ;;  %s2007_s8 = inlined_call_operand.vmem [shape: f32[8,128], index: 8, kind: output, shape index: {1}]   ;;  %s2008_s4 = inlined_call_operand.vmem [shape: f32[9,16,8], index: 4, kind: input, shape index: {}]   ;;  %s2009_s5 = inlined_call_operand.vmem [shape: f32[16,1], index: 5, kind: input, shape index: {}]   ;;  %s2010_s6 = inlined_call_operand.vmem [shape: f32[200,128], index: 6, kind: input, shape index: {}]   ;;  %s2011_s9 = inlined_call_operand.vmem [shape: f32[16,200], index: 9, kind: output, shape index: {2}]   ;;  %s2012_s10 = inlined_call_operand.vmem [shape: f32[16,32], index: 10, kind: output, shape index: {3}]  }
   0x1   :  { %v32_v0 = vld [vmem:[%s2002_s0 + $0x8] sm:$0xff]  ;;  %v31_v2 = vld [vmem:[%s2002_s0] sm:$0xff]  ;;  %138 = vmatprep.mubr.f32.mxu1 %v1542_v3  ;;  %1540 = vset.pattern.permute.xlu0 %v1543_v4  ;;  %v34_v15 = vld [vmem:[%s2002_s0 + $0x18] sm:$0xff]  ;;  %vm346_vm2 = vcmask 64512   ;;  %s1547_s25 = smov 116   ;;  %s1548_s26 = smov 108  }
   0x2   :  { %v36_v1 = vld [vmem:[%s2002_s0 + $0x28] sm:$0xff]  ;;  %v35_v6 = vld [vmem:[%s2002_s0 + $0x20] sm:$0xff]  ;;  %324 = vmatprep.mubr.f32.mxu0 %v1542_v3  ;;  %1541 = vset.pattern.permute.xlu1 %v1543_v4  ;;  %v38_v16 = vld [vmem:[%s2002_s0 + $0x38] sm:$0xff]  ;;  %s1549_s27 = smov 107   ;;  %s1550_s28 = smov 127   ;;  %vm520_vm3 = vcmask 1031168  }
   0x3   :  { %v1411_v5 = vpack.c.bf16 %v36_v1, %v32_v0  ;;  %v40_v7 = vld [vmem:[%s2002_s0 + $0x48] sm:$0xff]  ;;  %v1413_v9 = vpack.c.bf16 %v35_v6, %v31_v2  ;;  %v39_v11 = vld [vmem:[%s2002_s0 + $0x40] sm:$0xff]  ;;  %v33_v17 = vld [vmem:[%s2002_s0 + $0x10] sm:$0xff]  ;;  %v1419_v29 = vpack.c.bf16 %v38_v16, %v34_v15  ;;  %s1551_s29 = smov 106   ;;  %vm618_vm4 = vcmask 965632   ;;  %s1553_s17 = smov 96  }
   0x4   :  { %v44_v8 = vld [vmem:[%s2002_s0 + $0x68] sm:$0xff]  ;;  %v43_v12 = vld [vmem:[%s2002_s0 + $0x60] sm:$0xff]  ;;  %v37_v18 = vld [vmem:[%s2002_s0 + $0x30] sm:$0xff]  ;;  %vm716_vm5 = vcmask 957440   ;;  %vm814_vm6 = vcmask 949248   ;;  %vm342_vm7 = vcmask 1039360  }
   0x5   :  { %v1415_v10 = vpack.c.bf16 %v44_v8, %v40_v7  ;;  %1412 = vmatprep.subr.bf16.mxu1 %v1411_v5  ;;  %v1417_v13 = vpack.c.bf16 %v43_v12, %v39_v11  ;;  %v48_v14 = vld [vmem:[%s2002_s0 + $0x88] sm:$0xf]  ;;  %v42_v19 = vld [vmem:[%s2002_s0 + $0x58] sm:$0xff]  ;;  %v47_v21 = vld [vmem:[%s2002_s0 + $0x80] sm:$0xf]  ;;  %v1421_v35 = vpack.c.bf16 %v37_v18, %v33_v17  ;;  %vm912_vm8 = vcmask 883712  }
   0x6   :  { %1414 = vmatpush1.bf16.msra.mxu1 %v1413_v9  ;;  %v46_v20 = vld [vmem:[%s2002_s0 + $0x78] sm:$0xff]  ;;  %v51_v22 = vld [vmem:[%s2003_s2] sm:$0xff]  ;;  %v229_v23 = vld [vmem:[%s2004_s3 + $0x8] sm:$0xff]  ;;  %vm1010_vm9 = vcmask 875520   ;;  %vm1108_vm10 = vcmask 867328   ;;  %vm1216_vm11 = vcmask 588800  }
   0x7   :  { %1416 = vmatprep.subr.bf16.mxu1 %v1415_v10  ;;  %v231_v24 = vld [vmem:[%s2004_s3 + $0x18] sm:$0xff]  ;;  %54 = vperm.xlu0 %1540, %v51_v22   ;;  %v228_v26 = vld [vmem:[%s2004_s3] sm:$0xff]  ;;  %v230_v27 = vld [vmem:[%s2004_s3 + $0x10] sm:$0xff]  ;;  %v1423_v39 = vpack.c.bf16 %v46_v20, %v42_v19  ;;  %s1554_s18 = smov 64   ;;  %vm1350_vm12 = vcmask 261120  }
   0x8   :  { %v1427_v25 = vpack.c.bf16 %v231_v24, %v229_v23  ;;  %v233_v28 = vld [vmem:[%s2004_s3 + $0x28] sm:$0xff]  ;;  %v1429_v30 = vpack.c.bf16 %v230_v27, %v228_v26  ;;  %v235_v31 = vld [vmem:[%s2004_s3 + $0x38] sm:$0xff]  ;;  %v232_v32 = vld [vmem:[%s2004_s3 + $0x20] sm:$0xff] }
   0x9   :  { %v234_v33 = vld [vmem:[%s2004_s3 + $0x30] sm:$0xff]  ;;  %v30_v34 = vld [vmem:[%s2005_s1] sm:$0xff]  ;;  %v1431_v36 = vpack.c.bf16 %v235_v31, %v233_v28  ;;  %v237_v37 = vld [vmem:[%s2004_s3 + $0x48] sm:$0xff] }
   0xa   :  { %1418 = vmatpush1.bf16.msra.mxu1 %v1417_v13  ;;  %1428 = vmatprep.subr.bf16.mxu0 %v1427_v25  ;;  %v239_v38 = vld [vmem:[%s2004_s3 + $0x58] sm:$0xff]  ;;  %v41_v40 = vld [vmem:[%s2002_s0 + $0x50] sm:$0xff]  ;;  %v1433_v42 = vpack.c.bf16 %v234_v33, %v232_v32  ;;  %v236_v44 = vld [vmem:[%s2004_s3 + $0x40] sm:$0xff] }
   0xb   :  { %1369 = vmatprep.subr.msk.mxu1 %vm61_vm0, %v48_v14  ;;  %v45_v41 = vld [vmem:[%s2002_s0 + $0x70] sm:$0xff]  ;;  %1430 = vmatpush1.bf16.msra.mxu0 %v1429_v30  ;;  %v1435_v43 = vpack.c.bf16 %v239_v38, %v237_v37  ;;  %v50_v48 = vld [vmem:[%s2002_s0 + $0x98] sm:$0xf]  ;;  %v241_v50 = vld [vmem:[%s2004_s3 + $0x68] sm:$0xff] }
   0xc   :  { %1432 = vmatprep.subr.bf16.mxu0 %v1431_v36  ;;  %v238_v45 = vld [vmem:[%s2004_s3 + $0x50] sm:$0xff]  ;;  %v1425_v46 = vpack.c.bf16 %v45_v41, %v41_v40  ;;  %v243_v51 = vld [vmem:[%s2004_s3 + $0x78] sm:$0xff]  ;;  %v240_v53 = vld [vmem:[%s2004_s3 + $0x60] sm:$0xff] }
   0xd   :  { %v1437_v47 = vpack.c.bf16 %v238_v45, %v236_v44  ;;  %v49_v49 = vld [vmem:[%s2002_s0 + $0x90] sm:$0xf]  ;;  %v1439_v52 = vpack.c.bf16 %v243_v51, %v241_v50  ;;  %v245_v56 = vld [vmem:[%s2004_s3 + $0x88] sm:$0xff]  ;;  %v247_v57 = vld [vmem:[%s2004_s3 + $0x98] sm:$0xff] }
   0xe   :  { %1370 = vmatpush1.msk.msra.mxu1 %vm61_vm0, %v47_v21  ;;  %v242_v54 = vld [vmem:[%s2004_s3 + $0x70] sm:$0xff]  ;;  %v1443_v58 = vpack.c.bf16 %v247_v57, %v245_v56  ;;  %v244_v59 = vld [vmem:[%s2004_s3 + $0x80] sm:$0xff]  ;;  %v249_v62 = vld [vmem:[%s2004_s3 + $0xa8] sm:$0xff] }
   0xf   :  { %1371 = vmatmul.mubr.msk.f32.vlgmr.msra.gmra.mrb[0].mxu1 %vm57_vm1, %v30_v34  ;;  %1420 = vmatprep.subr.bf16.mxu1 %v1419_v29  ;;  %v1441_v55 = vpack.c.bf16 %v242_v54, %v240_v53  ;;  %v246_v60 = vld [vmem:[%s2004_s3 + $0x90] sm:$0xff]  ;;  %v251_v63 = vld [vmem:[%s2004_s3 + $0xb8] sm:$0xff]  ;;  %v248_v1 = vld [vmem:[%s2004_s3 + $0xa0] sm:$0xff] }
  0x10   :  { %1422 = vmatpush1.bf16.msra.mxu1 %v1421_v35  ;;  %209 = vmatprep.mubr.f32.mxu1 %v1542_v3  ;;  %v1445_v61 = vpack.c.bf16 %v246_v60, %v244_v59  ;;  %v1447_v0 = vpack.c.bf16 %v251_v63, %v249_v62  ;;  %v250_v2 = vld [vmem:[%s2004_s3 + $0xb0] sm:$0xff]  ;;  %v253_v5 = vld [vmem:[%s2004_s3 + $0xc8] sm:$0xff]  ;;  %v255_v6 = vld [vmem:[%s2004_s3 + $0xd8] sm:$0xff] }
  0x11   :  { %1424 = vmatprep.subr.bf16.mxu1 %v1423_v39  ;;  %1434 = vmatpush1.bf16.msra.mxu0 %v1433_v42  ;;  %v1449_v4 = vpack.c.bf16 %v250_v2, %v248_v1  ;;  %v1451_v7 = vpack.c.bf16 %v255_v6, %v253_v5  ;;  %v252_v8 = vld [vmem:[%s2004_s3 + $0xc0] sm:$0xff]  ;;  %v254_v9 = vld [vmem:[%s2004_s3 + $0xd0] sm:$0xff]  ;;  %v257_v11 = vld [vmem:[%s2004_s3 + $0xe8] sm:$0xff] }
  0x12   :  { %1436 = vmatprep.subr.bf16.mxu0 %v1435_v43  ;;  %v1453_v10 = vpack.c.bf16 %v254_v9, %v252_v8  ;;  %v259_v12 = vld [vmem:[%s2004_s3 + $0xf8] sm:$0xff]  ;;  %v256_v14 = vld [vmem:[%s2004_s3 + $0xe0] sm:$0xff]  ;;  %v258_v15 = vld [vmem:[%s2004_s3 + $0xf0] sm:$0xff]  ;;  %v1552_v9 = vmov 0.0|0.0  }
  0x13   :  { %v1455_v13 = vpack.c.bf16 %v259_v12, %v257_v11  ;;  %v1457_v16 = vpack.c.bf16 %v258_v15, %v256_v14  ;;  %v331_v35 = vld [vmem:[%s2008_s4] sm:$0xff]  ;;  %v332_v36 = vld [vmem:[%s2008_s4 + $0x8] sm:$0xff]  ;;  %v1386_v53 = vld [vmem:[%s2008_s4 + $0x38] sm:$0xff] }
  0x14   :  { %1426 = vmatpush1.bf16.msra.mxu1 %v1425_v46  ;;  %v1200_v37 = vld [vmem:[%s2009_s5 + $0x8] sm:$0xff]  ;;  %v1199_v38 = vld [vmem:[%s2009_s5] sm:$0xff]  ;;  %v1393_v63 = vld [vmem:[%s2008_s4 + $0x50] sm:$0xff] }
  0x15   :  { %1372 = vmatprep.subr.msk.mxu1 %vm61_vm0, %v50_v48  ;;  %1438 = vmatpush1.bf16.msra.mxu0 %v1437_v47  ;;  %v1381_v41 = vld [vmem:[%s2008_s4 + $0x20] sm:$0xff]  ;;  %v1382_v45 = vld [vmem:[%s2008_s4 + $0x28] sm:$0xff]  ;;  %v1394_v6 = vld [vmem:[%s2008_s4 + $0x58] sm:$0xff] }
  0x16   :  { %1440 = vmatprep.subr.bf16.mxu0 %v1439_v52  ;;  %v1389_v56 = vld [vmem:[%s2008_s4 + $0x40] sm:$0xff]  ;;  %v1390_v60 = vld [vmem:[%s2008_s4 + $0x48] sm:$0xff]  ;;  %v1227_v11 = vld [vmem:[%s2010_s6 + $0x18] sm:$0xff] }
  0x17   :  { %v1224_v2 = vld [vmem:[%s2010_s6] sm:$0xff]  ;;  %v1229_v15 = vld [vmem:[%s2010_s6 + $0x28] sm:$0xff] }
  0x18   :  { %1373 = vmatpush1.msk.msra.mxu1 %vm61_vm0, %v49_v49  ;;  %v1385_v49 = vld [vmem:[%s2008_s4 + $0x30] sm:$0xff]  ;;  %v1397_v12 = vld [vmem:[%s2008_s4 + $0x60] sm:$0xff] }
  0x19   :  { %1374 = vmatmul.mubr.msk.f32.vlgmr.msra.gmra.mrb[2].mxu1 %vm57_vm1, %v30_v34  ;;  %1442 = vmatpush1.bf16.msra.mxu0 %v1441_v55  ;;  %v1228_v14 = vld [vmem:[%s2010_s6 + $0x20] sm:$0xff] }
  0x1a   :  { %500 = vmatprep.mubr.f32.mxu1 %v1542_v3  ;;  %1444 = vmatprep.subr.bf16.mxu0 %v1443_v58 }
  0x1d   :  { %1446 = vmatpush1.bf16.msra.mxu0 %v1445_v61 }
  0x1e   :  { %1448 = vmatprep.subr.bf16.mxu0 %v1447_v0  ;;  %v1375_v0 = vld [vmem:[%s2008_s4 + $0x10] sm:$0xff] }
  0x21   :  { %1450 = vmatpush1.bf16.msra.mxu0 %v1449_v4  ;;  %v1225_v4 = vld [vmem:[%s2010_s6 + $0x8] sm:$0xff] }
  0x22   :  { %1452 = vmatprep.subr.bf16.mxu0 %v1451_v7  ;;  %v1376_v7 = vld [vmem:[%s2008_s4 + $0x18] sm:$0xff]  ;;  %v1460_v8 = vpack.c.bf16 %v1225_v4, %v1224_v2 }
  0x25   :  { %1454 = vmatpush1.bf16.msra.mxu0 %v1453_v10  ;;  %v1226_v10 = vld [vmem:[%s2010_s6 + $0x10] sm:$0xff] }
  0x26   :  { %1456 = vmatprep.subr.bf16.mxu0 %v1455_v13  ;;  %v1463_v13 = vpack.c.bf16 %v1227_v11, %v1226_v10 }
  0x29   :  { %1458 = vmatpush1.bf16.msra.mxu0 %v1457_v16 }
  0x86   :  { %v55_v17 = vpop.permute.xlu0 %54 }
  0xe2   :  { %v140_v18 = vpop.f32.mrb[0].mxu1 }
  0xe3   :  { %v141_v19 = vadd.f32 %v140_v18, %v55_v17  ;;  %v142_v20 = vpop.f32.mrb[1].mxu1  ;;  %v1398_v18 = vld [vmem:[%s2008_s4 + $0x68] sm:$0xff] }
  0xe4   :  { %v143_v21 = vadd.f32 %v142_v20, %v55_v17  ;;  %v1230_v20 = vld [vmem:[%s2010_s6 + $0x30] sm:$0xff] }
  0xe5   :  { %216 = vst [vmem:[%s2006_s7] sm:$0xff] %v141_v19  ;;  %v220_v22 = vmax.f32 %v141_v19, 0.0  ;;  %v1466_v19 = vpack.c.bf16 %v1229_v15, %v1228_v14 }
  0xe6   :  { %217 = vst [vmem:[%s2006_s7 + $0x8] sm:$0xff] %v143_v21  ;;  %v221_v23 = vmax.f32 %v143_v21, 0.0  ;;  %v1231_v21 = vld [vmem:[%s2010_s6 + $0x38] sm:$0xff] }
  0xe8   :  { %v224_v24 = vmax.f32 %v220_v22, %v221_v23  ;;  %v1401_v23 = vld [vmem:[%s2008_s4 + $0x70] sm:$0xff] }
  0xec   :  { %v211_v25 = vpop.f32.mrb[2].mxu1 }
  0xed   :  { %v212_v26 = vadd.f32 %v211_v25, %v55_v17  ;;  %v213_v27 = vpop.f32.mrb[3].mxu1  ;;  %v1232_v25 = vld [vmem:[%s2010_s6 + $0x40] sm:$0xff] }
  0xee   :  { %v214_v28 = vadd.f32 %v213_v27, %v55_v17 }
  0xef   :  { %218 = vst [vmem:[%s2006_s7 + $0x10] sm:$0xff] %v212_v26  ;;  %v222_v29 = vmax.f32 %v212_v26, 0.0  ;;  %v1233_v26 = vld [vmem:[%s2010_s6 + $0x48] sm:$0xff] }
  0xf0   :  { %219 = vst [vmem:[%s2006_s7 + $0x18] sm:$0xff] %v214_v28  ;;  %v223_v30 = vmax.f32 %v214_v28, 0.0  ;;  %s1545_s7 = smov 118   ;;  %v1402_v28 = vld [vmem:[%s2008_s4 + $0x78] sm:$0xff] }
  0xf2   :  { %v225_v31 = vmax.f32 %v222_v29, %v223_v30  ;;  %v1472_v29 = vpack.c.bf16 %v1233_v26, %v1232_v25  ;;  %v1234_v30 = vld [vmem:[%s2010_s6 + $0x50] sm:$0xff] }
  0xf4   :  { %v226_v32 = vmax.f32 %v224_v24, %v225_v31  ;;  %v1469_v24 = vpack.c.bf16 %v1231_v21, %v1230_v20  ;;  %v1235_v31 = vld [vmem:[%s2010_s6 + $0x58] sm:$0xff] }
  0xf6   :  { %227 = vst [vmem:[%s2007_s8] sm:$0xff] %v226_v32  ;;  %325 = vmatmul.mubr.f32.vlgmr.msra.gmra.mrb[0].mxu0 %v226_v32  ;;  %v1405_v32 = vld [vmem:[%s2008_s4 + $0x80] sm:$0xff] }
  0xf7   :  { %417 = vmatprep.mubr.f32.mxu0 %v1542_v3 }
 0x1c9   :  { %v326_v33 = vpop.f32.mrb[0].mxu0 }
 0x1ca   :  { %516 = vrot.lane.b32.xlu0 %v326_v33, %s1544_s21  ;;  %v328_v34 = vpop.f32.mrb[1].mxu0 }
 0x1cb   :  { %518 = vrot.lane.b32.xlu1 %v328_v34, %s1544_s21  ;;  %436 = vmatprep.subr.mxu1 %v328_v34 }
 0x1cc   :  { %437 = vmatpush1.msra.mxu1 %v326_v33 }
 0x1cd   :  { %1379 = vmatmul.mubr.msk.f32.vlgmr.msra.gmra.mrb[4].mxu1 %vm346_vm2, %v331_v35  ;;  %v1237_v35 = vld [vmem:[%s2010_s6 + $0x68] sm:$0xff] }
 0x1ce   :  { %616 = vrot.lane.b32.xlu0 %v328_v34, %s1545_s7  ;;  %506 = vmatprep.mubr.f32.mxu1 %v1542_v3 }
 0x1cf   :  { %614 = vrot.lane.b32.xlu1 %v326_v33, %s1545_s7 }
 0x1d1   :  { %1380 = vmatmul.mubr.msk.f32.gmra.mrb[6].mxu1 %vm346_vm2, %v332_v36  ;;  %v1406_v36 = vld [vmem:[%s2008_s4 + $0x88] sm:$0xff] }
 0x1d2   :  { %714 = vrot.lane.b32.xlu0 %v328_v34, %s1546_s24  ;;  %594 = vmatprep.mubr.f32.mxu1 %v1542_v3 }
 0x1d3   :  { %712 = vrot.lane.b32.xlu1 %v326_v33, %s1546_s24 }
 0x1d6   :  { %812 = vrot.lane.b32.xlu0 %v328_v34, %s1547_s25 }
 0x1d7   :  { %810 = vrot.lane.b32.xlu1 %v326_v33, %s1547_s25 }
 0x1da   :  { %910 = vrot.lane.b32.xlu0 %v328_v34, %s1548_s26 }
 0x1db   :  { %908 = vrot.lane.b32.xlu1 %v326_v33, %s1548_s26 }
 0x1de   :  { %1008 = vrot.lane.b32.xlu0 %v328_v34, %s1549_s27 }
 0x1df   :  { %1006 = vrot.lane.b32.xlu1 %v326_v33, %s1549_s27 }
 0x1e2   :  { %340 = vrot.lane.b32.xlu0 %v328_v34, %s1550_s28 }
 0x1e3   :  { %338 = vrot.lane.b32.xlu1 %v326_v33, %s1550_s28 }
 0x1e6   :  { %1106 = vrot.lane.b32.xlu0 %v328_v34, %s1551_s29  ;;  %v1236_v34 = vld [vmem:[%s2010_s6 + $0x60] sm:$0xff] }
 0x1e7   :  { %1104 = vrot.lane.b32.xlu1 %v326_v33, %s1551_s29  ;;  %v1475_v33 = vpack.c.bf16 %v1235_v31, %v1234_v30 }
 0x1ea   :  { %1208 = vperm.xlu0 %1540, %v1200_v37   ;;  %v1478_v37 = vpack.c.bf16 %v1237_v35, %v1236_v34 }
 0x1eb   :  { %1203 = vperm.xlu1 %1541, %v1199_v38   ;;  %v1238_v38 = vld [vmem:[%s2010_s6 + $0x70] sm:$0xff] }
 0x23c   :  { %v517_v39 = vpop.permute.xlu0 %516 }
 0x23d   :  { %v519_v40 = vpop.permute.xlu1 %518 }
 0x23e   :  { %v521_v42 = vsel %vm520_vm3, %v517_v39, %v519_v40  ;;  %530 = vmatprep.subr.mxu1 %v519_v40  ;;  %v1239_v39 = vld [vmem:[%s2010_s6 + $0x78] sm:$0xff] }
 0x23f   :  { %531 = vmatpush1.msra.mxu1 %v521_v42  ;;  %v1481_v40 = vpack.c.bf16 %v1239_v39, %v1238_v38  ;;  %v1241_v42 = vld [vmem:[%s2010_s6 + $0x88] sm:$0xff] }
 0x240   :  { %v617_v43 = vpop.permute.xlu0 %616  ;;  %1383 = vmatmul.mubr.msk.f32.vlgmr.msra.gmra.mrb[4].mxu1 %vm346_vm2, %v1381_v41  ;;  %v1240_v41 = vld [vmem:[%s2010_s6 + $0x80] sm:$0xff] }
 0x241   :  { %v615_v44 = vpop.permute.xlu1 %614  ;;  %628 = vmatprep.subr.mxu1 %v617_v43  ;;  %600 = vmatprep.mubr.f32.mxu1 %v1542_v3 }
 0x242   :  { %v619_v46 = vsel %vm618_vm4, %v615_v44, %v617_v43  ;;  %v1484_v43 = vpack.c.bf16 %v1241_v42, %v1240_v41  ;;  %v1242_v44 = vld [vmem:[%s2010_s6 + $0x90] sm:$0xff] }
 0x243   :  { %629 = vmatpush1.msra.mxu1 %v619_v46 }
 0x244   :  { %v715_v47 = vpop.permute.xlu0 %714  ;;  %1384 = vmatmul.mubr.msk.f32.gmra.mrb[6].mxu1 %vm346_vm2, %v1382_v45  ;;  %v1243_v45 = vld [vmem:[%s2010_s6 + $0x98] sm:$0xff] }
 0x245   :  { %v713_v48 = vpop.permute.xlu1 %712  ;;  %726 = vmatprep.subr.mxu1 %v715_v47  ;;  %692 = vmatprep.mubr.f32.mxu1 %v1542_v3  ;;  %v1487_v46 = vpack.c.bf16 %v1243_v45, %v1242_v44 }
 0x246   :  { %v717_v50 = vsel %vm716_vm5, %v713_v48, %v715_v47  ;;  %v1244_v47 = vld [vmem:[%s2010_s6 + $0xa0] sm:$0xff]  ;;  %v1245_v48 = vld [vmem:[%s2010_s6 + $0xa8] sm:$0xff] }
 0x248   :  { %v813_v51 = vpop.permute.xlu0 %812  ;;  %1387 = vmatmul.mubr.msk.f32.vlgmr.msra.gmra.mrb[4].mxu1 %vm346_vm2, %v1385_v49  ;;  %v1490_v49 = vpack.c.bf16 %v1245_v48, %v1244_v47 }
 0x249   :  { %727 = vmatpush1.msra.mxu1 %v717_v50  ;;  %v811_v52 = vpop.permute.xlu1 %810  ;;  %698 = vmatprep.mubr.f32.mxu1 %v1542_v3  ;;  %v1246_v50 = vld [vmem:[%s2010_s6 + $0xb0] sm:$0xff] }
 0x24a   :  { %824 = vmatprep.subr.mxu1 %v813_v51  ;;  %v815_v57 = vsel %vm814_vm6, %v811_v52, %v813_v51  ;;  %v1247_v51 = vld [vmem:[%s2010_s6 + $0xb8] sm:$0xff] }
 0x24b   :  { %v1493_v52 = vpack.c.bf16 %v1247_v51, %v1246_v50 }
 0x24c   :  { %v911_v54 = vpop.permute.xlu0 %910  ;;  %1388 = vmatmul.mubr.msk.f32.gmra.mrb[6].mxu1 %vm346_vm2, %v1386_v53  ;;  %v1248_v53 = vld [vmem:[%s2010_s6 + $0xc0] sm:$0xff] }
 0x24d   :  { %v909_v55 = vpop.permute.xlu1 %908  ;;  %790 = vmatprep.mubr.f32.mxu1 %v1542_v3 }
 0x24e   :  { %v913_v5 = vsel %vm912_vm8, %v909_v55, %v911_v54 }
 0x250   :  { %v1009_v58 = vpop.permute.xlu0 %1008  ;;  %1391 = vmatmul.mubr.msk.f32.vlgmr.msra.gmra.mrb[4].mxu1 %vm346_vm2, %v1389_v56 }
 0x251   :  { %825 = vmatpush1.msra.mxu1 %v815_v57  ;;  %v1007_v59 = vpop.permute.xlu1 %1006  ;;  %796 = vmatprep.mubr.f32.mxu1 %v1542_v3 }
 0x252   :  { %922 = vmatprep.subr.mxu1 %v911_v54  ;;  %v1011_v16 = vsel %vm1010_vm9, %v1007_v59, %v1009_v58 }
 0x254   :  { %v341_v61 = vpop.permute.xlu0 %340  ;;  %1392 = vmatmul.mubr.msk.f32.gmra.mrb[6].mxu1 %vm346_vm2, %v1390_v60 }
 0x255   :  { %353 = vmatprep.subr.mxu0 %v341_v61  ;;  %v339_v62 = vpop.permute.xlu1 %338  ;;  %888 = vmatprep.mubr.f32.mxu1 %v1542_v3 }
 0x256   :  { %v343_v1 = vsel %vm342_vm7, %v339_v62, %v341_v61 }
 0x257   :  { %354 = vmatpush1.msra.mxu0 %v343_v1 }
 0x258   :  { %1395 = vmatmul.mubr.msk.f32.vlgmr.msra.gmra.mrb[4].mxu1 %vm346_vm2, %v1393_v63  ;;  %1377 = vmatmul.mubr.msk.f32.vlgmr.msra.gmra.mrb[2].mxu0 %vm346_vm2, %v1375_v0  ;;  %v1107_v17 = vpop.permute.xlu0 %1106 }
 0x259   :  { %923 = vmatpush1.msra.mxu1 %v913_v5  ;;  %894 = vmatprep.mubr.f32.mxu1 %v1542_v3  ;;  %v1105_v22 = vpop.permute.xlu1 %1104 }
 0x25a   :  { %1020 = vmatprep.subr.mxu1 %v1009_v58  ;;  %423 = vmatprep.mubr.f32.mxu0 %v1542_v3  ;;  %v1109_v27 = vsel %vm1108_vm10, %v1105_v22, %v1107_v17 }
 0x25b   :  { %1459 = vmatprep.subr.bf16.mxu0 %v1552_v9 }
 0x25c   :  { %1396 = vmatmul.mubr.msk.f32.gmra.mrb[6].mxu1 %vm346_vm2, %v1394_v6  ;;  %1378 = vmatmul.mubr.msk.f32.gmra.mrb[4].mxu0 %vm346_vm2, %v1376_v7 }
 0x25d   :  { %986 = vmatprep.mubr.f32.mxu1 %v1542_v3  ;;  %1461 = vmatpush1.bf16.msra.mxu0 %v1460_v8 }
 0x25e   :  { %1462 = vmatprep.subr.bf16.mxu0 %v1552_v9 }
 0x260   :  { %1399 = vmatmul.mubr.msk.f32.vlgmr.msra.gmra.mrb[4].mxu1 %vm346_vm2, %v1397_v12 }
 0x261   :  { %1021 = vmatpush1.msra.mxu1 %v1011_v16  ;;  %992 = vmatprep.mubr.f32.mxu1 %v1542_v3 }
 0x262   :  { %1118 = vmatprep.subr.mxu1 %v1107_v17  ;;  %1464 = vmatpush1.bf16.msra.mxu0 %v1463_v13 }
 0x263   :  { %1465 = vmatprep.subr.bf16.mxu0 %v1552_v9 }
 0x264   :  { %1400 = vmatmul.mubr.msk.f32.gmra.mrb[6].mxu1 %vm346_vm2, %v1398_v18 }
 0x265   :  { %1084 = vmatprep.mubr.f32.mxu1 %v1542_v3 }
 0x266   :  { %1467 = vmatpush1.bf16.msra.mxu0 %v1466_v19 }
 0x267   :  { %1468 = vmatprep.subr.bf16.mxu0 %v1552_v9 }
 0x268   :  { %1403 = vmatmul.mubr.msk.f32.vlgmr.msra.gmra.mrb[4].mxu1 %vm346_vm2, %v1401_v23 }
 0x269   :  { %1119 = vmatpush1.msra.mxu1 %v1109_v27  ;;  %1090 = vmatprep.mubr.f32.mxu1 %v1542_v3  ;;  %v1209_v4 = vpop.permute.xlu0 %1208 }
 0x26a   :  { %1470 = vmatpush1.bf16.msra.mxu0 %v1469_v24  ;;  %v1204_v59 = vpop.permute.xlu1 %1203 }
 0x26b   :  { %1471 = vmatprep.subr.bf16.mxu0 %v1552_v9 }
 0x26c   :  { %1404 = vmatmul.mubr.msk.f32.gmra.mrb[6].mxu1 %vm346_vm2, %v1402_v28 }
 0x26d   :  { %1182 = vmatprep.mubr.f32.mxu1 %v1542_v3 }
 0x26e   :  { %1473 = vmatpush1.bf16.msra.mxu0 %v1472_v29 }
 0x26f   :  { %1474 = vmatprep.subr.bf16.mxu0 %v1552_v9 }
 0x270   :  { %1407 = vmatmul.mubr.msk.f32.vlgmr.msra.gmra.mrb[4].mxu1 %vm346_vm2, %v1405_v32 }
 0x271   :  { %1188 = vmatprep.mubr.f32.mxu1 %v1542_v3 }
 0x272   :  { %1476 = vmatpush1.bf16.msra.mxu0 %v1475_v33 }
 0x273   :  { %1477 = vmatprep.subr.bf16.mxu0 %v1552_v9 }
 0x274   :  { %1408 = vmatmul.mubr.msk.f32.gmra.mrb[6].mxu1 %vm346_vm2, %v1406_v36 }
 0x276   :  { %1479 = vmatpush1.bf16.msra.mxu0 %v1478_v37 }
 0x277   :  { %1480 = vmatprep.subr.bf16.mxu0 %v1552_v9 }
 0x27a   :  { %1482 = vmatpush1.bf16.msra.mxu0 %v1481_v40 }
 0x27b   :  { %1483 = vmatprep.subr.bf16.mxu0 %v1552_v9 }
 0x27e   :  { %1485 = vmatpush1.bf16.msra.mxu0 %v1484_v43 }
 0x27f   :  { %1486 = vmatprep.subr.bf16.mxu0 %v1552_v9 }
 0x282   :  { %1488 = vmatpush1.bf16.msra.mxu0 %v1487_v46 }
 0x283   :  { %1489 = vmatprep.subr.bf16.mxu0 %v1552_v9 }
 0x286   :  { %1491 = vmatpush1.bf16.msra.mxu0 %v1490_v49 }
 0x287   :  { %1492 = vmatprep.subr.bf16.mxu0 %v1552_v9 }
 0x28a   :  { %1494 = vmatpush1.bf16.msra.mxu0 %v1493_v52 }
 0x28b   :  { %1303 = vmatprep.subr.mxu0 %v1542_v3 }
 0x28e   :  { %1304 = vmatpush1.msra.mxu0 %v1248_v53 }
 0x32b   :  { %v419_v54 = vpop.f32.mrb[2].mxu0 }
 0x32c   :  { %v421_v55 = vpop.f32.mrb[3].mxu0 }
 0x32f   :  { %v425_v56 = vpop.f32.mrb[4].mxu0 }
 0x330   :  { %v427_v57 = vpop.f32.mrb[5].mxu0 }
 0x343   :  { %v1184_v58 = vpop.f32.mrb[4].mxu1 }
 0x344   :  { %v1495_v60 = vadd.f32 %v1184_v58, %v419_v54  ;;  %v1186_v61 = vpop.f32.mrb[5].mxu1 }
 0x345   :  { %v1496_v62 = vadd.f32 %v1186_v61, %v421_v55 }
 0x346   :  { %v1211_v63 = vadd.f32 %v1495_v60, %v1204_v59 }
 0x347   :  { %v1212_v0 = vadd.f32 %v1496_v62, %v1204_v59  ;;  %v1190_v1 = vpop.f32.mrb[6].mxu1 }
 0x348   :  { %1215 = vst [vmem:[%s2011_s9] sm:$0xff] %v1211_v63  ;;  %v1497_v3 = vadd.f32 %v1190_v1, %v425_v56  ;;  %v1192_v2 = vpop.f32.mrb[7].mxu1  ;;  %v1220_v7 = vmax.f32 %v1211_v63, 0.0 }
 0x349   :  { %v1221_v5 = vmax.f32 %v1212_v0, 0.0  ;;  %v1498_v6 = vadd.f32 %v1192_v2, %v427_v57  ;;  %1217 = vst.msk [vmem:[%s2011_s9 + $0x8] sm:$0xff] %vm1216_vm11, %v1212_v0 }
 0x34a   :  { %v1213_v8 = vadd.f32 %v1497_v3, %v1209_v4 }
 0x34b   :  { %v1214_v9 = vadd.f32 %v1498_v6, %v1209_v4  ;;  %1409 = vmatprep.mubr.msk.f32.mxu0 %vm1216_vm11, %v1221_v5 }
 0x34c   :  { %1218 = vst [vmem:[%s2011_s9 + $0x10] sm:$0xff] %v1213_v8  ;;  %1320 = vmatmul.mubr.f32.vlgmr.msra.gmra.mrb[6].mxu0 %v1220_v7  ;;  %v1222_v11 = vmax.f32 %v1213_v8, 0.0 }
 0x34d   :  { %v1223_v10 = vmax.f32 %v1214_v9, 0.0  ;;  %1219 = vst.msk [vmem:[%s2011_s9 + $0x18] sm:$0xff] %vm1216_vm11, %v1214_v9 }
 0x34f   :  { %1410 = vmatprep.mubr.msk.f32.mxu0 %vm1216_vm11, %v1223_v10 }
 0x350   :  { %1325 = vmatmul.mubr.f32.gmra.mrb[8].mxu0 %v1222_v11 }
 0x41f   :  { %v1321_v12 = vpop.f32.mrb[6].mxu0 }
 0x420   :  { %1332 = vrot.lane.b32.xlu1 %v1321_v12, %s1553_s17  ;;  %v1323_v13 = vpop.f32.mrb[7].mxu0 }
 0x423   :  { %v1326_v14 = vpop.f32.mrb[8].mxu0 }
 0x424   :  { %1334 = vrot.lane.b32.xlu0 %v1326_v14, %s1553_s17  ;;  %v1328_v15 = vpop.f32.mrb[9].mxu0 }
 0x492   :  { %v1333_v16 = vpop.permute.xlu1 %1332 }
 0x493   :  { %v1338_v17 = vmax.f32 %v1321_v12, %v1333_v16 }
 0x495   :  { %1342 = vrot.lane.b32.xlu1 %v1338_v17, %s1554_s18 }
 0x496   :  { %v1335_v18 = vpop.permute.xlu0 %1334 }
 0x497   :  { %v1339_v19 = vmax.f32 %v1326_v14, %v1335_v18 }
 0x499   :  { %1344 = vrot.lane.b32.xlu0 %v1339_v19, %s1554_s18 }
 0x507   :  { %v1343_v20 = vpop.permute.xlu1 %1342 }
 0x508   :  { %v1348_v21 = vmax.f32 %v1338_v17, %v1343_v20 }
 0x50a   :  { %1351 = vst.msk [vmem:[%s2012_s10] sm:$0xff] %vm1350_vm12, %v1348_v21 }
 0x50b   :  { %v1345_v22 = vpop.permute.xlu0 %1344 }
 0x50c   :  { %v1349_v23 = vmax.f32 %v1339_v19, %v1345_v22 }
 0x50e   :  { %1352 = vst.msk [vmem:[%s2012_s10 + $0x8] sm:$0xff] %vm1350_vm12, %v1349_v23 }

// kernel: _fused_forward.3
= control target key start
LH: loop header
LB: loop body
LE: loop exit
PB: predicated region body
PF: predicated region fallthrough
CT: control target
= control target key end

     0   :  { %12 = vsyncpa [#allocation3], 0  ;;  %s590_s0 = inlined_call_operand.vmem [shape: f32[2,256], index: 0, kind: input, shape index: {}]   ;;  %s591_s1 = inlined_call_operand.vmem [shape: f32[256,32], index: 1, kind: input, shape index: {}]   ;;  %s592_s2 = inlined_call_operand.vmem [shape: f32[1,32], index: 2, kind: input, shape index: {}]   ;;  %s593_s3 = inlined_call_operand.vmem [shape: f32[32,10], index: 3, kind: input, shape index: {}]   ;;  %s594_s4 = inlined_call_operand.vmem [shape: f32[1,10], index: 4, kind: input, shape index: {}]   ;;  %s595_s5 = inlined_call_operand.hbm [shape: f32[2,32], index: 5, kind: output, shape index: {0}]   ;;  %s596_s6 = inlined_call_operand.hbm [shape: f32[2,10], index: 6, kind: output, shape index: {1}]  }
   0x1   :  { %v41_v0 = vld [vmem:[%s591_s1 + $0x80] sm:$0xff]  ;;  %v42_v1 = vld [vmem:[%s591_s1 + $0x88] sm:$0xff]  ;;  %v43_v5 = vld [vmem:[%s591_s1 + $0x90] sm:$0xff] }
   0x2   :  { %v25_v2 = vld [vmem:[%s591_s1] sm:$0xff]  ;;  %v318_v3 = vpack.c.bf16 %v42_v1, %v41_v0  ;;  %v26_v4 = vld [vmem:[%s591_s1 + $0x8] sm:$0xff]  ;;  %v44_v6 = vld [vmem:[%s591_s1 + $0x98] sm:$0xff] }
   0x3   :  { %v320_v7 = vpack.c.bf16 %v26_v4, %v25_v2  ;;  %v322_v8 = vpack.c.bf16 %v44_v6, %v43_v5  ;;  %v27_v9 = vld [vmem:[%s591_s1 + $0x10] sm:$0xff]  ;;  %v28_v10 = vld [vmem:[%s591_s1 + $0x18] sm:$0xff]  ;;  %v45_v11 = vld [vmem:[%s591_s1 + $0xa0] sm:$0xff] }
   0x4   :  { %319 = vmatprep.subr.bf16.mxu0 %v318_v3  ;;  %v46_v12 = vld [vmem:[%s591_s1 + $0xa8] sm:$0xff]  ;;  %v324_v13 = vpack.c.bf16 %v28_v10, %v27_v9  ;;  %v29_v15 = vld [vmem:[%s591_s1 + $0x20] sm:$0xff]  ;;  %v47_v17 = vld [vmem:[%s591_s1 + $0xb0] sm:$0xff] }
   0x5   :  { %321 = vmatpush3.bf16.msra.mxu0 %v320_v7  ;;  %v326_v14 = vpack.c.bf16 %v46_v12, %v45_v11  ;;  %v30_v16 = vld [vmem:[%s591_s1 + $0x28] sm:$0xff]  ;;  %v48_v18 = vld [vmem:[%s591_s1 + $0xb8] sm:$0xff]  ;;  %v31_v21 = vld [vmem:[%s591_s1 + $0x30] sm:$0xff] }
   0x6   :  { %323 = vmatprep.subr.bf16.mxu0 %v322_v8  ;;  %v328_v19 = vpack.c.bf16 %v30_v16, %v29_v15  ;;  %v330_v20 = vpack.c.bf16 %v48_v18, %v47_v17  ;;  %v32_v22 = vld [vmem:[%s591_s1 + $0x38] sm:$0xff]  ;;  %v49_v23 = vld [vmem:[%s591_s1 + $0xc0] sm:$0xff]  ;;  %v50_v24 = vld [vmem:[%s591_s1 + $0xc8] sm:$0xff] }
   0x7   :  { %v264_v25 = vld.sshfl [vmem:[%s590_s0] sm:$0x33 pattern:$0x76325410] }
   0x8   :  { %v72_v26 = vcombine.high %v264_v25, %v264_v25 }
   0x9   :  { %325 = vmatpush3.bf16.msra.mxu0 %v324_v13 }
   0xa   :  { %327 = vmatprep.subr.bf16.mxu0 %v326_v14 }
   0xb   :  { %13 = vsyncpa [#allocation5], 0  ;;  %v332_v27 = vpack.c.bf16 %v32_v22, %v31_v21  ;;  %v334_v28 = vpack.c.bf16 %v50_v24, %v49_v23  ;;  %v33_v29 = vld [vmem:[%s591_s1 + $0x40] sm:$0xff]  ;;  %v34_v30 = vld [vmem:[%s591_s1 + $0x48] sm:$0xff]  ;;  %139 = vmatprep.mubr.f32.mxu0 %v72_v26  ;;  %v409_v53 = vmov 0.0|0.0   ;;  %vm410_vm0 = vmmov 0  }
   0xc   :  { %v51_v31 = vld [vmem:[%s591_s1 + $0xd0] sm:$0xff]  ;;  %v52_v32 = vld [vmem:[%s591_s1 + $0xd8] sm:$0xff]  ;;  %v336_v33 = vpack.c.bf16 %v34_v30, %v33_v29  ;;  %v53_v37 = vld [vmem:[%s591_s1 + $0xe0] sm:$0xff]  ;;  %350 = vmatprep.subr.bf16.mxu1 %v409_v53  ;;  %v411_v57 = vmov 0.0   ;;  %vm145_vm1 = vcmask 254976   ;;  %vm159_vm2 = vcmask 261120  }
   0xd   :  { %329 = vmatpush3.bf16.msra.mxu0 %v328_v19  ;;  %v338_v34 = vpack.c.bf16 %v52_v32, %v51_v31  ;;  %v35_v35 = vld [vmem:[%s591_s1 + $0x50] sm:$0xff]  ;;  %v36_v36 = vld [vmem:[%s591_s1 + $0x58] sm:$0xff]  ;;  %v54_v38 = vld [vmem:[%s591_s1 + $0xe8] sm:$0xff]  ;;  %315 = vmatprep.mubr.msk.f32.mxu1 %vm410_vm0, %v411_v57  ;;  %s412_s22 = smov [#allocation2]  }
   0xe   :  { %331 = vmatprep.subr.bf16.mxu0 %v330_v20  ;;  %v340_v39 = vpack.c.bf16 %v36_v36, %v35_v35  ;;  %v342_v40 = vpack.c.bf16 %v54_v38, %v53_v37  ;;  %v37_v41 = vld [vmem:[%s591_s1 + $0x60] sm:$0xff]  ;;  %v38_v42 = vld [vmem:[%s591_s1 + $0x68] sm:$0xff]  ;;  %v55_v43 = vld [vmem:[%s591_s1 + $0xf0] sm:$0xff] }
   0xf   :  { %v56_v44 = vld [vmem:[%s591_s1 + $0xf8] sm:$0xff]  ;;  %v344_v45 = vpack.c.bf16 %v38_v42, %v37_v41  ;;  %v39_v47 = vld [vmem:[%s591_s1 + $0x70] sm:$0xff]  ;;  %v148_v50 = vld [vmem:[%s593_s3] sm:$0xff] }
  0x10   :  { %v346_v46 = vpack.c.bf16 %v56_v44, %v55_v43  ;;  %v40_v48 = vld [vmem:[%s591_s1 + $0x78] sm:$0xff]  ;;  %v149_v51 = vld [vmem:[%s593_s3 + $0x8] sm:$0xff]  ;;  %v150_v54 = vld [vmem:[%s593_s3 + $0x10] sm:$0xff] }
  0x11   :  { %333 = vmatpush3.bf16.msra.mxu0 %v332_v27  ;;  %v348_v49 = vpack.c.bf16 %v40_v48, %v39_v47  ;;  %v351_v52 = vpack.c.bf16 %v149_v51, %v148_v50  ;;  %v151_v55 = vld [vmem:[%s593_s3 + $0x18] sm:$0xff]  ;;  %v263_v59 = vld [vmem:[%s592_s2] ss:$0 sm:$0xff]  ;;  %s241_s3 = sshll.u32 %s412_s22, 4  ;;  %s242_s3 = int_to_ptr.vmem [resolvable:$true] %s241_s3 }
  0x12   :  { %335 = vmatprep.subr.bf16.mxu0 %v334_v28  ;;  %v354_v56 = vpack.c.bf16 %v151_v55, %v150_v54  ;;  %s361_s23 = scalar_lea.vmem %s242_s3, 32  ;;  %p366_p1 = scmp.lt.s32.totalorder %s242_s3, %s242_s3 }
  0x13   :  { %352 = vmatpush3.bf16.msra.mxu1 %v351_v52  ;;  %p362_p0 = scmp.ne.s32.totalorder %s242_s3, %s361_s23  ;;  %p367_p2 = scmp.lt.s32.totalorder %s361_s23, %s361_s23 }
  0x14   :  { %353 = vmatprep.subr.bf16.mxu1 %v409_v53 }
  0x15   :  { %337 = vmatpush3.bf16.msra.mxu0 %v336_v33  ;;  %p368_p3 = por %p367_p2, %p366_p1 }
  0x16   :  { %339 = vmatprep.subr.bf16.mxu0 %v338_v34 }
  0x17   :  { %355 = vmatpush3.bf16.msra.mxu1 %v354_v56  ;;  %p369_p4 = pnand %p368_p3, %p362_p0 }
  0x19   :  { %341 = vmatpush3.bf16.msra.mxu0 %v340_v39 }
  0x1a   :  { %343 = vmatprep.subr.bf16.mxu0 %v342_v40 }
  0x1d   :  { %345 = vmatpush3.bf16.msra.mxu0 %v344_v45 }
  0x1e   :  { %347 = vmatprep.subr.bf16.mxu0 %v346_v46 }
  0x21   :  { %349 = vmatpush3.bf16.msra.mxu0 %v348_v49 }
  0x24   :  { %140 = vmatmul.mubr.f32.vlgmr.msra.gmra.mrb[0].mxu0 %v264_v25 }
  0xf7   :  { %v299_v58 = vpop.f32.mrb[0].mxu0 }
  0xf8   :  { %v300_v60 = vpop.f32.mrb[1].mxu0 }
  0xf9   :  { %v301_v61 = vadd.f32 %v300_v60, %v299_v58 }
  0xfb   :  { %v142_v62 = vadd.f32 %v301_v61, %v263_v59 }
  0xfd   :  { %v147_v63 = vmax.f32 %v142_v62, 0.0  ;;  %146 = vst.msk [vmem:[#allocation2] sm:$0x3] %vm145_vm1, %v142_v62 }
  0xff   :  { %316 = vmatmul.mubr.msk.f32.vlgmr.msra.gmra.mrb[0].mxu1 %vm159_vm2, %v147_v63 }
 0x100   :  { %372 = shalt.err (!%p369_p4)
}
 0x101   :  { %s373_s25 = scalar_lea.hbm %s595_s5, 32 }
 0x102   :  { %p374_p5 = scmp.ne.s32.totalorder %s595_s5, %s373_s25  ;;  %p377_p6 = scmp.lt.u32.totalorder %s373_s25, %s595_s5 }
 0x104   :  { %p379_p7 = pnand %p377_p6, %p374_p5 }
 0x106   :  { %382 = shalt.err (!%p379_p7)
}
 0x107   :  { %244 = dma.vmem_to_hbm [thread:$0]  %s242_s3, 32, %s595_s5, [#allocation3]   ;;  %v265_v0 = vld [vmem:[%s594_s4] ss:$0 sm:$0xff]  ;;  %vm233_vm3 = vcmask 74752  }
 0x108   :  { %s413_s10 = smov [#allocation4]  }
 0x109   :  { %s251_s11 = sshll.u32 %s413_s10, 4  ;;  %s252_s11 = int_to_ptr.vmem [resolvable:$true] %s251_s11 }
 0x10a   :  { %s383_s12 = scalar_lea.vmem %s252_s11, 32  ;;  %p388_p9 = scmp.lt.s32.totalorder %s252_s11, %s252_s11 }
 0x10b   :  { %p384_p8 = scmp.ne.s32.totalorder %s252_s11, %s383_s12  ;;  %p389_p10 = scmp.lt.s32.totalorder %s383_s12, %s383_s12 }
 0x10d   :  { %p390_p11 = por %p389_p10, %p388_p9 }
 0x10f   :  { %p391_p12 = pnand %p390_p11, %p384_p8 }
 0x1d2   :  { %v229_v1 = vpop.f32.mrb[0].mxu1 }
 0x1d3   :  { %v230_v2 = vadd.f32 %v265_v0, %v229_v1  ;;  %v317_v3 = vpop.f32.mrb[1].mxu1 }
 0x1d5   :  { %234 = vst.msk [vmem:[#allocation4] sm:$0x3] %vm233_vm3, %v230_v2 }
 0x1d6   :  { %394 = shalt.err (!%p391_p12)
}
 0x1d7   :  { %s395_s14 = scalar_lea.hbm %s596_s6, 32 }
 0x1d8   :  { %p396_p13 = scmp.ne.s32.totalorder %s596_s6, %s395_s14  ;;  %p399_p0 = scmp.lt.u32.totalorder %s395_s14, %s596_s6 }
 0x1da   :  { %p401_p1 = pnand %p399_p0, %p396_p13 }
 0x1dc   :  { %404 = shalt.err (!%p401_p1)
}
 0x1dd   :  { %254 = dma.vmem_to_hbm [thread:$0]  %s252_s11, 32, %s596_s6, [#allocation5]  }
 0x1de   :  { %405 = dma.done.wait [#allocation3], 32  }
 0x1df   :  { %406 = vsyncadd [#allocation3], 4294967264 }
 0x1e0   :  { %407 = dma.done.wait [#allocation5], 32  }
 0x1e1   :  { %408 = vsyncadd [#allocation5], 4294967264 }
 0x1e2   :  { %261 = vsyncpa [#allocation3], 1 }
 0x1e3   :  { %262 = vsyncpa [#allocation5], 1 }

</bundles_post_ra>
